<compile_context>
chip_gen: v5e
topology: v5e:2x2
jax: 0.10.0
libtpu: 0.0.40
codegen_flags: <defaults>
</compile_context>

<pallas_src>
import functools
import math

import jax
import jax.numpy as jnp
from jax.experimental import pallas as pl
from jax.experimental.pallas import tpu as pltpu

_NEG_INF = -1e30  # finite "minus infinity" (avoids inf-inf NaNs in online softmax)


def _cast(x, dtype):
    return x if x.dtype == dtype else x.astype(dtype)


# ---------------------------------------------------------------------------
# Kernel A: fused node-wise projections (large row tiles over nodes).
#   proj = feat @ [W_fc | W_res]   -> one 256-lane-wide MXU matmul (fp, resval)
#   elr  = feat @ [w_el | w_er]    -> (tile, 2H), attn_l/attn_r folded into W_fc
# ---------------------------------------------------------------------------
def _proj_kernel(feat_ref, w_fused_ref, w_elr_ref, fp_ref, rv_ref, elr_ref,
                 *, hf, mxu_dtype):
    x = _cast(feat_ref[...], mxu_dtype)
    proj = jnp.dot(x, _cast(w_fused_ref[...], mxu_dtype),
                   preferred_element_type=jnp.float32)
    elr = jnp.dot(x, _cast(w_elr_ref[...], mxu_dtype),
                  preferred_element_type=jnp.float32)
    fp_ref[...] = proj[:, :hf].astype(fp_ref.dtype)      # feat_src (maybe bf16)
    rv_ref[...] = proj[:, hf:]                            # residual (f32)
    elr_ref[...] = elr                                    # [el | er] (f32)


# ---------------------------------------------------------------------------
# Kernel B: per-head PReLU + masked ONLINE edge-softmax + aggregation.
# Grid = (dst_tile, src_tile); src is the (inner) reduction axis.
# Scratch m/l/acc carry the running max / denominator / unnormalized numerator.
# ---------------------------------------------------------------------------
def _attn_agg_kernel(adj_ref, elt_ref, er_ref, fp_ref, rv_ref, bias_ref, alpha_ref,
                     out_ref, m_ref, l_ref, acc_ref,
                     *, num_heads, out_feats, mxu_dtype):
    s = pl.program_id(1)
    num_s = pl.num_programs(1)
    F = out_feats

    @pl.when(s == 0)
    def _():
        m_ref[...] = jnp.full(m_ref.shape, _NEG_INF, jnp.float32)
        l_ref[...] = jnp.zeros(l_ref.shape, jnp.float32)
        acc_ref[...] = jnp.zeros(acc_ref.shape, jnp.float32)

    # Additive edge mask shared by all heads: 0 on edges, -1e30 on non-edges.
    # (adj arrives as an int8 0/1 mask; widen once per block.)
    neg = (adj_ref[...].astype(jnp.float32) - 1.0) * jnp.float32(1e30)

    fp = fp_ref[...]                       # (TS, H*F)  src features (mxu dtype)
    er = er_ref[...]                       # (TD, H)    dst attention term (f32)
    elt = elt_ref[...]                     # (H, TS)    src attention term (f32)

    acc_old = acc_ref[...]                 # (TD, H*F)
    m_old_all = m_ref[...]                 # (TD, H)
    l_old_all = l_ref[...]                 # (TD, H)

    acc_parts, m_parts, l_parts = [], [], []
    for h in range(num_heads):
        alpha_h = alpha_ref[h]                             # PReLU slope (SMEM scalar)
        # u_add_v + per-head PReLU + additive edge mask
        e = er[:, h:h + 1] + elt[h:h + 1, :]               # (TD, TS)
        e = jnp.where(e > 0.0, e, alpha_h * e)             # PReLU_h
        e = e + neg                                        # mask non-edges
        # online (flash-style) softmax over the source axis
        m_old = m_old_all[:, h:h + 1]
        m_new = jnp.maximum(m_old, jnp.max(e, axis=-1, keepdims=True))
        scale = jnp.exp(m_old - m_new)                     # rescale old partials
        p = jnp.exp(e - m_new)                             # exactly 0 on non-edges
        l_parts.append(scale * l_old_all[:, h:h + 1]
                       + jnp.sum(p, axis=-1, keepdims=True))
        # unnormalized aggregation on the MXU (normalization deferred to finalize)
        fs = fp[:, h * F:(h + 1) * F]                      # (TS, F)
        acc_parts.append(scale * acc_old[:, h * F:(h + 1) * F]
                         + jnp.dot(_cast(p, mxu_dtype), fs,
                                   preferred_element_type=jnp.float32))
        m_parts.append(m_new)

    m_ref[...] = jnp.concatenate(m_parts, axis=-1)
    l_ref[...] = jnp.concatenate(l_parts, axis=-1)
    acc_ref[...] = jnp.concatenate(acc_parts, axis=-1)

    @pl.when(s == num_s - 1)
    def _():
        acc = acc_ref[...]
        l = jnp.maximum(l_ref[...], 1e-20)                 # (TD, H)
        outs = []
        for h in range(num_heads):
            inv = pl.reciprocal(l[:, h:h + 1], approx=True)   # EUP, off the VPU path
            outs.append(acc[:, h * F:(h + 1) * F] * inv)
        rst = jnp.concatenate(outs, axis=-1)               # (TD, H*F) lane-dense
        out_ref[...] = (rst + rv_ref[...] + bias_ref[...]).astype(out_ref.dtype)


# ---------------------------------------------------------------------------
# Wrapper
# ---------------------------------------------------------------------------
def graph_conv_forward(adj, feat, params, *, num_heads, out_feats,
                       tile_nodes=128, proj_tile_max=1024, use_bf16=True):
    """Pallas forward pass of GraphConvLayer.

    adj:  (N, N) dense adjacency mask, adj[v, u] != 0 iff edge u -> v.
    feat: (N, in_feats) float32 node features.
    params: w_fc_t (Din, H*F), w_res_t (Din, H*F), attn_l/attn_r (H, F),
            prelu_alpha (H,), bias (H*F,).
    Returns rst: (N, H, F) float32.
    """
    H, F = num_heads, out_feats
    HF = H * F
    N, d_in = feat.shape
    mxu_dtype = jnp.bfloat16 if use_bf16 else jnp.float32

    if tile_nodes % 128 != 0:
        raise ValueError("tile_nodes must be a multiple of 128")

    # cdiv-sized grid + zero padding so arbitrary N works.
    n_tiles = int(pl.cdiv(N, tile_nodes))
    n_pad = n_tiles * tile_nodes
    if n_pad != N:
        feat = jnp.pad(feat, ((0, n_pad - N), (0, 0)))
        adj = jnp.pad(adj, ((0, n_pad - N), (0, n_pad - N)))

    # adjacency as int8 0/1 mask: 4x less HBM/DMA traffic + smaller VMEM blocks.
    adj_i8 = (adj > 0).astype(jnp.int8)

    # --- tiny host-side weight prep -----------------------------------------
    # el/er are linear in feat: fold attn_l/attn_r into the fc weight once, and
    # fuse fc + res_fc into a single 2*HF (=256) wide weight for the MXU.
    w_fc = params["w_fc_t"]
    w_el = jnp.einsum("dhf,hf->dh", w_fc.reshape(d_in, H, F), params["attn_l"])
    w_er = jnp.einsum("dhf,hf->dh", w_fc.reshape(d_in, H, F), params["attn_r"])
    w_elr = jnp.concatenate([w_el, w_er], axis=1)                  # (Din, 2H)
    w_fused = jnp.concatenate([w_fc, params["w_res_t"]], axis=1)   # (Din, 2*HF)

    # --- kernel A: projections with a large row tile (amortize grid overhead) ---
    a_factor = 1
    for f in (8, 4, 2):
        if n_tiles % f == 0 and tile_nodes * f <= proj_tile_max:
            a_factor = f
            break
    tile_a = tile_nodes * a_factor
    grid_a = (n_pad // tile_a,)

    fp, rv, elr = pl.pallas_call(
        functools.partial(_proj_kernel, hf=HF, mxu_dtype=mxu_dtype),
        grid=grid_a,
        in_specs=[
            pl.BlockSpec((tile_a, d_in), lambda i: (i, 0)),
            pl.BlockSpec((d_in, 2 * HF), lambda i: (0, 0)),
            pl.BlockSpec((d_in, 2 * H), lambda i: (0, 0)),
        ],
        out_specs=[
            pl.BlockSpec((tile_a, HF), lambda i: (i, 0)),
            pl.BlockSpec((tile_a, HF), lambda i: (i, 0)),
            pl.BlockSpec((tile_a, 2 * H), lambda i: (i, 0)),
        ],
        out_shape=[
            jax.ShapeDtypeStruct((n_pad, HF), mxu_dtype),    # feat_src (re-read per dst tile)
            jax.ShapeDtypeStruct((n_pad, HF), jnp.float32),  # residual
            jax.ShapeDtypeStruct((n_pad, 2 * H), jnp.float32),
        ],
        compiler_params=pltpu.CompilerParams(dimension_semantics=("parallel",)),
    )(feat, w_fused, w_elr)

    # Tiny layout plumbing: src axis of el on lanes so kernel B broadcasts it as rows.
    el_t = elr[:, :H].T          # (H, n_pad)
    er = elr[:, H:]              # (n_pad, H)

    # --- kernel B: source-tiled flash-style masked softmax + aggregation ----
    grid_b = (n_tiles, n_tiles)  # (dst tile [parallel], src tile [reduction, last])
    out = pl.pallas_call(
        functools.partial(_attn_agg_kernel, num_heads=H, out_feats=F,
                          mxu_dtype=mxu_dtype),
        grid=grid_b,
        in_specs=[
            pl.BlockSpec((tile_nodes, tile_nodes), lambda d, s: (d, s)),  # adj[dst, src]
            pl.BlockSpec((H, tile_nodes), lambda d, s: (0, s)),           # el^T src tile
            pl.BlockSpec((tile_nodes, H), lambda d, s: (d, 0)),           # er dst tile
            pl.BlockSpec((tile_nodes, HF), lambda d, s: (s, 0)),          # feat_src src tile
            pl.BlockSpec((tile_nodes, HF), lambda d, s: (d, 0)),          # residual dst tile
            pl.BlockSpec((1, HF), lambda d, s: (0, 0)),                   # bias
            pl.BlockSpec(memory_space=pltpu.MemorySpace.SMEM),            # PReLU slopes
        ],
        out_specs=pl.BlockSpec((tile_nodes, HF), lambda d, s: (d, 0)),
        out_shape=jax.ShapeDtypeStruct((n_pad, HF), jnp.float32),
        scratch_shapes=[
            pltpu.VMEM((tile_nodes, H), jnp.float32),    # running max
            pltpu.VMEM((tile_nodes, H), jnp.float32),    # running denominator
            pltpu.VMEM((tile_nodes, HF), jnp.float32),   # running (unnormalized) numerator
        ],
        compiler_params=pltpu.CompilerParams(
            dimension_semantics=("parallel", "arbitrary")),
    )(adj_i8, el_t, er, fp, rv, params["bias"].reshape(1, HF), params["prelu_alpha"])

    return out[:N].reshape(N, H, F)


# ---------------------------------------------------------------------------
# Parameter init (mirrors the module's xavier_normal(gain=relu) / PReLU=0.25;
# bias is random here instead of 0 so the bias path is actually exercised).
# ---------------------------------------------------------------------------
def init_graph_conv_params(key, in_feats, out_feats, num_heads):
    H, F = num_heads, out_feats
    HF = H * F
    gain = math.sqrt(2.0)                       # nn.init.calculate_gain('relu')

    def xavier_normal(k, shape, fan_in, fan_out):
        std = gain * math.sqrt(2.0 / (fan_in + fan_out))
        return std * jax.random.normal(k, shape, jnp.float32)

    k1, k2, k3, k4, k5 = jax.random.split(key, 5)
    return {
        # stored as (in, out) == torch Linear weight (out, in) transposed
        "w_fc_t": xavier_normal(k1, (in_feats, HF), in_feats, HF),
        "w_res_t": xavier_normal(k2, (in_feats, HF), in_feats, HF),
        "attn_l": xavier_normal(k3, (H, F), H * F, F),
        "attn_r": xavier_normal(k4, (H, F), H * F, F),
        "prelu_alpha": jnp.full((H,), 0.25, jnp.float32),
        "bias": 0.5 * jax.random.normal(k5, (HF,), jnp.float32),
    }


# ---------------------------------------------------------------------------
# Pure-JAX reference (natural formulation of the PyTorch forward, f32-exact).
# ---------------------------------------------------------------------------
def graph_conv_reference(adj, feat, params, *, num_heads, out_feats):
    H, F = num_heads, out_feats
    N = feat.shape[0]
    with jax.default_matmul_precision("highest"):
        fp = jnp.dot(feat, params["w_fc_t"]).reshape(N, H, F)
        el = jnp.sum(fp * params["attn_l"][None], axis=-1)        # (N, H)
        er = jnp.sum(fp * params["attn_r"][None], axis=-1)        # (N, H)
        e = er[:, None, :] + el[None, :, :]                       # (dst, src, H)
        alpha = params["prelu_alpha"]
        e = jnp.where(e > 0, e, alpha[None, None, :] * e)         # per-head PReLU
        mask = adj[:, :, None] > 0
        e = jnp.where(mask, e, -1e30)
        m = jnp.max(e, axis=1, keepdims=True)
        p = jnp.exp(e - m) * adj[:, :, None]
        denom = jnp.sum(p, axis=1, keepdims=True)
        a = p / jnp.maximum(denom, 1e-20)
        rst = jnp.einsum("vuh,uhf->vhf", a, fp)
        rst = rst + jnp.dot(feat, params["w_res_t"]).reshape(N, H, F)
        rst = rst + params["bias"].reshape(1, H, F)
    return rst


if __name__ == "__main__":
    # GraphConvLayer(in_feats=64, out_feats=32, num_heads=4) on a 200-node graph
    # (N deliberately NOT a multiple of the 128-row tile to exercise cdiv+padding,
    #  and >128 so kernel B's source-tiled online softmax runs multiple src steps).
    N, in_feats, out_feats, num_heads = 200, 64, 32, 4

    key = jax.random.PRNGKey(0)
    kfeat, kadj, kparam = jax.random.split(key, 3)

    feat = jax.random.normal(kfeat, (N, in_feats), jnp.float32)
    # random sparse directed graph + self loops, as a dense 0/1 mask adj[v, u]
    adj = (jax.random.uniform(kadj, (N, N)) < 0.05).astype(jnp.float32)
    adj = jnp.maximum(adj, jnp.eye(N, dtype=jnp.float32))

    params = init_graph_conv_params(kparam, in_feats, out_feats, num_heads)

    ref = graph_conv_reference(adj, feat, params,
                               num_heads=num_heads, out_feats=out_feats)

    # Full-f32 MXU path: tight check against the reference.
    out = graph_conv_forward(adj, feat, params,
                             num_heads=num_heads, out_feats=out_feats,
                             tile_nodes=128, use_bf16=False)
    out = jax.block_until_ready(out)
    assert out.shape == (N, num_heads, out_feats)
    assert jnp.allclose(out, ref, atol=2e-2, rtol=2e-2), (
        float(jnp.max(jnp.abs(out - ref))))

    # bf16-operand path (default for v6e/v7x): looser tolerance.
    out_bf16 = graph_conv_forward(adj, feat, params,
                                  num_heads=num_heads, out_feats=out_feats,
                                  tile_nodes=128, use_bf16=True)
    out_bf16 = jax.block_until_ready(out_bf16)
    assert jnp.allclose(out_bf16, ref, atol=1.5e-1, rtol=1.5e-1), (
        float(jnp.max(jnp.abs(out_bf16 - ref))))

    print("KERNEL_OK")
</pallas_src>

<mosaic_0001>
module attributes {stable_mosaic.version = 11 : i64} {
  func.func @_proj_kernel(%arg0: i32, %arg1: memref<256x64xf32, #tpu.memory_space<vmem>>, %arg2: memref<64x256xf32, #tpu.memory_space<vmem>>, %arg3: memref<64x8xf32, #tpu.memory_space<vmem>>, %arg4: memref<256x128xf32, #tpu.memory_space<vmem>>, %arg5: memref<256x128xf32, #tpu.memory_space<vmem>>, %arg6: memref<256x8xf32, #tpu.memory_space<vmem>>) attributes {dimension_semantics = [#tpu.dimension_semantics<parallel>], iteration_bounds = array<i64: 1>, scalar_prefetch = 0 : i64, scratch_operands = 0 : i64, tpu.core_type = #tpu.core_type<tc>, window_params = [{transform_indices = @transform_0, window_bounds = array<i64: 256, 64>}, {pipeline_mode = #tpu.pipeline_mode<synchronous>, transform_indices = @transform_1, window_bounds = array<i64: 64, 256>}, {pipeline_mode = #tpu.pipeline_mode<synchronous>, transform_indices = @transform_2, window_bounds = array<i64: 64, 8>}, {transform_indices = @transform_3, window_bounds = array<i64: 256, 128>}, {transform_indices = @transform_4, window_bounds = array<i64: 256, 128>}, {transform_indices = @transform_5, window_bounds = array<i64: 256, 8>}]} {
    %c0 = arith.constant 0 : index
    %c0_0 = arith.constant 0 : index
    %0 = vector.load %arg1[%c0, %c0_0] : memref<256x64xf32, #tpu.memory_space<vmem>>, vector<256x64xf32>
    %c0_1 = arith.constant 0 : index
    %c0_2 = arith.constant 0 : index
    %1 = vector.load %arg2[%c0_1, %c0_2] : memref<64x256xf32, #tpu.memory_space<vmem>>, vector<64x256xf32>
    %cst = arith.constant dense<0.000000e+00> : vector<256x256xf32>
    %2 = tpu.matmul %0, %1, %cst {dimension_numbers = #tpu.dot_dimension_numbers<[1], [0], [0], [1], [0, 0, 1, 1], [], []>} : vector<256x64xf32>, vector<64x256xf32>, vector<256x256xf32> -> vector<256x256xf32>
    %c0_3 = arith.constant 0 : index
    %c0_4 = arith.constant 0 : index
    %3 = vector.load %arg3[%c0_3, %c0_4] : memref<64x8xf32, #tpu.memory_space<vmem>>, vector<64x8xf32>
    %cst_5 = arith.constant dense<0.000000e+00> : vector<256x8xf32>
    %4 = tpu.matmul %0, %3, %cst_5 {dimension_numbers = #tpu.dot_dimension_numbers<[1], [0], [0], [1], [0, 0, 1, 1], [], []>} : vector<256x64xf32>, vector<64x8xf32>, vector<256x8xf32> -> vector<256x8xf32>
    %5 = vector.extract_strided_slice %2 {offsets = [0, 0], sizes = [256, 128], strides = [1, 1]} : vector<256x256xf32> to vector<256x128xf32>
    %c0_6 = arith.constant 0 : index
    %c0_7 = arith.constant 0 : index
    %6 = vector.load %arg4[%c0_6, %c0_7] : memref<256x128xf32, #tpu.memory_space<vmem>>, vector<256x128xf32>
    tpu.vector_store %arg4[%c0_6, %c0_7], %5 {strides = array<i32>} : memref<256x128xf32, #tpu.memory_space<vmem>>, vector<256x128xf32>,
    %7 = vector.extract_strided_slice %2 {offsets = [0, 128], sizes = [256, 128], strides = [1, 1]} : vector<256x256xf32> to vector<256x128xf32>
    %c0_8 = arith.constant 0 : index
    %c0_9 = arith.constant 0 : index
    %8 = vector.load %arg5[%c0_8, %c0_9] : memref<256x128xf32, #tpu.memory_space<vmem>>, vector<256x128xf32>
    tpu.vector_store %arg5[%c0_8, %c0_9], %7 {strides = array<i32>} : memref<256x128xf32, #tpu.memory_space<vmem>>, vector<256x128xf32>,
    %c0_10 = arith.constant 0 : index
    %c0_11 = arith.constant 0 : index
    %9 = vector.load %arg6[%c0_10, %c0_11] : memref<256x8xf32, #tpu.memory_space<vmem>>, vector<256x8xf32>
    tpu.vector_store %arg6[%c0_10, %c0_11], %4 {strides = array<i32>} : memref<256x8xf32, #tpu.memory_space<vmem>>, vector<256x8xf32>,
    return
  }
  func.func @transform_0(%arg0: i32) -> (i32, i32) {
    %c0_i32 = arith.constant 0 : i32
    %c0_i32_0 = arith.constant 0 : i32
    return %arg0, %c0_i32 : i32, i32
  }
  func.func @transform_1(%arg0: i32) -> (i32, i32) {
    %c0_i32 = arith.constant 0 : i32
    %c0_i32_0 = arith.constant 0 : i32
    %c0_i32_1 = arith.constant 0 : i32
    return %c0_i32, %c0_i32_0 : i32, i32
  }
  func.func @transform_2(%arg0: i32) -> (i32, i32) {
    %c0_i32 = arith.constant 0 : i32
    %c0_i32_0 = arith.constant 0 : i32
    %c0_i32_1 = arith.constant 0 : i32
    return %c0_i32, %c0_i32_0 : i32, i32
  }
  func.func @transform_3(%arg0: i32) -> (i32, i32) {
    %c0_i32 = arith.constant 0 : i32
    %c0_i32_0 = arith.constant 0 : i32
    return %arg0, %c0_i32 : i32, i32
  }
  func.func @transform_4(%arg0: i32) -> (i32, i32) {
    %c0_i32 = arith.constant 0 : i32
    %c0_i32_0 = arith.constant 0 : i32
    return %arg0, %c0_i32 : i32, i32
  }
  func.func @transform_5(%arg0: i32) -> (i32, i32) {
    %c0_i32 = arith.constant 0 : i32
    %c0_i32_0 = arith.constant 0 : i32
    return %arg0, %c0_i32 : i32, i32
  }
}

</mosaic_0001>

<bundles_post_ra>
// kernel: tpu_custom_call.1
= control target key start
LH: loop header
LB: loop body
LE: loop exit
PB: predicated region body
PF: predicated region fallthrough
CT: control target
= control target key end

     0   :  { %11 = vsyncpa [#allocation3], 0  ;;  %s1320_s0 = inlined_call_operand.vmem [shape: f32[256,64], index: 0, kind: input, shape index: {}]   ;;  %s1321_s1 = inlined_call_operand.vmem [shape: f32[64,256], index: 1, kind: input, shape index: {}]   ;;  %s1322_s2 = inlined_call_operand.vmem [shape: f32[64,8], index: 2, kind: input, shape index: {}]   ;;  %s1323_s3 = inlined_call_operand.hbm [shape: f32[256,128], index: 3, kind: output, shape index: {0}]   ;;  %s1324_s4 = inlined_call_operand.hbm [shape: f32[256,128], index: 4, kind: output, shape index: {1}]   ;;  %s1325_s5 = inlined_call_operand.vmem [shape: f32[256,8], index: 5, kind: output, shape index: {2}]  }
   0x1   :  { %v65_v0 = vld [vmem:[%s1321_s1 + $0x70] sm:$0xff]  ;;  %v864_v1 = vld [vmem:[%s1322_s2 + $0x38] sm:$0xff]  ;;  %v63_v2 = vld [vmem:[%s1321_s1 + $0x60] sm:$0xff] }
   0x2   :  { %744 = vmatpush.msra.mxu3 %v65_v0  ;;  %406 = vmatpush.msra.mxu2 %v864_v1  ;;  %v873_v3 = vld [vmem:[%s1322_s2 + $0x30] sm:$0xff]  ;;  %v881_v5 = vld [vmem:[%s1322_s2 + $0x28] sm:$0xff]  ;;  %v66_v6 = vld [vmem:[%s1321_s1 + $0x78] sm:$0xff] }
   0x3   :  { %v61_v4 = vld [vmem:[%s1321_s1 + $0x50] sm:$0xff]  ;;  %172 = vmatpush.msra.mxu0 %v65_v0  ;;  %v64_v7 = vld [vmem:[%s1321_s1 + $0x68] sm:$0xff]  ;;  %285 = vmatpush.msra.mxu1 %v66_v6  ;;  %v59_v8 = vld [vmem:[%s1321_s1 + $0x40] sm:$0xff] }
   0x4   :  { %745 = vmatpush.msra.mxu3 %v63_v2  ;;  %407 = vmatpush.msra.mxu2 %v873_v3  ;;  %v896_v9 = vld [vmem:[%s1322_s2 + $0x20] sm:$0xff]  ;;  %v62_v10 = vld [vmem:[%s1321_s1 + $0x58] sm:$0xff]  ;;  %v57_v11 = vld [vmem:[%s1321_s1 + $0x30] sm:$0xff] }
   0x5   :  { %173 = vmatpush.msra.mxu0 %v63_v2  ;;  %286 = vmatpush.msra.mxu1 %v64_v7  ;;  %v908_v12 = vld [vmem:[%s1322_s2 + $0x18] sm:$0xff]  ;;  %v60_v13 = vld [vmem:[%s1321_s1 + $0x48] sm:$0xff]  ;;  %v55_v14 = vld [vmem:[%s1321_s1 + $0x20] sm:$0xff] }
   0x6   :  { %746 = vmatpush.msra.mxu3 %v61_v4  ;;  %408 = vmatpush.msra.mxu2 %v881_v5  ;;  %v920_v15 = vld [vmem:[%s1322_s2 + $0x10] sm:$0xff]  ;;  %v58_v16 = vld [vmem:[%s1321_s1 + $0x38] sm:$0xff]  ;;  %v391_v18 = vld [vmem:[%s1322_s2 + $0x8] sm:$0xff] }
   0x7   :  { %174 = vmatpush.msra.mxu0 %v61_v4  ;;  %287 = vmatpush.msra.mxu1 %v62_v10  ;;  %v53_v17 = vld [vmem:[%s1321_s1 + $0x10] sm:$0xff] }
   0x8   :  { %747 = vmatpush.msra.mxu3 %v59_v8  ;;  %409 = vmatpush.msra.mxu2 %v896_v9 }
   0x9   :  { %175 = vmatpush.msra.mxu0 %v59_v8  ;;  %288 = vmatpush.msra.mxu1 %v60_v13 }
   0xa   :  { %748 = vmatpush.msra.mxu3 %v57_v11  ;;  %410 = vmatpush.msra.mxu2 %v908_v12 }
   0xb   :  { %176 = vmatpush.msra.mxu0 %v57_v11 }
   0xc   :  { %12 = vsyncpa [#allocation5], 0  ;;  %749 = vmatpush.msra.mxu3 %v55_v14  ;;  %411 = vmatpush.msra.mxu2 %v920_v15  ;;  %v56_v19 = vld [vmem:[%s1321_s1 + $0x28] sm:$0xff]  ;;  %v51_v20 = vld [vmem:[%s1321_s1] sm:$0xff]  ;;  %vm67_vm0 = vcmask 523264   ;;  %vm575_vm1 = vcmask 64512  }
   0xd   :  { %289 = vmatpush.msra.mxu1 %v58_v16  ;;  %v390_v21 = vld [vmem:[%s1322_s2] sm:$0xff]  ;;  %177 = vmatpush.msra.mxu0 %v55_v14  ;;  %v54_v24 = vld [vmem:[%s1321_s1 + $0x18] sm:$0xff]  ;;  %v52_v25 = vld [vmem:[%s1321_s1 + $0x8] sm:$0xff]  ;;  %s824_s24 = smov [#allocation2]   ;;  %s614_s28 = sshll.u32 %s1323_s3, 4  ;;  %s615_s28 = int_to_ptr.hbm [resolvable:$true] %s614_s28 }
   0xe   :  { %750 = vmatpush.msra.mxu3 %v53_v17  ;;  %412 = vmatpush.msra.mxu2 %v391_v18  ;;  %v945_v22 = vld [vmem:[%s1320_s0 + $0xc0] sm:$0xff]  ;;  %v964_v26 = vld [vmem:[%s1320_s0 + $0xc8] sm:$0xff]  ;;  %v977_v28 = vld [vmem:[%s1320_s0 + $0xd0] sm:$0xff]  ;;  %s612_s25 = sshll.u32 %s824_s24, 4  ;;  %s825_s8 = smov [#allocation4]   ;;  %s613_s25 = int_to_ptr.vmem [resolvable:$true] %s612_s25 }
   0xf   :  { %v19_v23 = vld [vmem:[%s1320_s0] sm:$0xff]  ;;  %290 = vmatpush.msra.mxu1 %v56_v19  ;;  %178 = vmatpush.msra.mxu0 %v53_v17  ;;  %v20_v27 = vld [vmem:[%s1320_s0 + $0x8] sm:$0xff]  ;;  %v21_v29 = vld [vmem:[%s1320_s0 + $0x10] sm:$0xff]  ;;  %s625_s9 = sshll.u32 %s825_s8, 4  ;;  %s627_s12 = sshll.u32 %s1324_s4, 4  ;;  %s626_s9 = int_to_ptr.vmem [resolvable:$true] %s625_s9  ;;  %s628_s12 = int_to_ptr.hbm [resolvable:$true] %s627_s12 }
  0x10   :  { %751 = vmatpush.msra.mxu3 %v51_v20  ;;  %413 = vmatpush.msra.mxu2 %v390_v21  ;;  %v992_v30 = vld [vmem:[%s1320_s0 + $0xd8] sm:$0xff]  ;;  %v1008_v32 = vld [vmem:[%s1320_s0 + $0xe0] sm:$0xff]  ;;  %v1022_v34 = vld [vmem:[%s1320_s0 + $0xe8] sm:$0xff]  ;;  %s826_s3 = smov 128   ;;  %s827_s13 = smov 8  }
  0x11   :  { %672 = vmatmul.msk.f32.vlgmr.msra.gmra.mxu3 %vm67_vm0, %v945_v22  ;;  %712 = vmatmul.msk.f32.vlgmr.msra.gmra.mxu2 %vm67_vm0, %v19_v23  ;;  %v22_v31 = vld [vmem:[%s1320_s0 + $0x18] sm:$0xff]  ;;  %v23_v33 = vld [vmem:[%s1320_s0 + $0x20] sm:$0xff]  ;;  %v24_v35 = vld [vmem:[%s1320_s0 + $0x28] sm:$0xff] }
  0x12   :  { %752 = vmatpush.msrb.mxu3 %v66_v6  ;;  %291 = vmatpush.msra.mxu1 %v54_v24  ;;  %v1035_v36 = vld [vmem:[%s1320_s0 + $0xf0] sm:$0xff]  ;;  %v1048_v38 = vld [vmem:[%s1320_s0 + $0xf8] sm:$0xff]  ;;  %v27_v40 = vld [vmem:[%s1320_s0 + $0x40] sm:$0xff] }
  0x13   :  { %179 = vmatpush.msra.mxu0 %v51_v20  ;;  %v25_v37 = vld [vmem:[%s1320_s0 + $0x30] sm:$0xff]  ;;  %v26_v39 = vld [vmem:[%s1320_s0 + $0x38] sm:$0xff]  ;;  %v28_v41 = vld [vmem:[%s1320_s0 + $0x48] sm:$0xff] }
  0x14   :  { %292 = vmatpush.msra.mxu1 %v52_v25  ;;  %648 = vmatmul.msk.f32.vlgmr.msra.gmra.mxu0 %vm67_vm0, %v19_v23  ;;  %v29_v42 = vld [vmem:[%s1320_s0 + $0x50] sm:$0xff]  ;;  %v30_v43 = vld [vmem:[%s1320_s0 + $0x58] sm:$0xff]  ;;  %v31_v44 = vld [vmem:[%s1320_s0 + $0x60] sm:$0xff] }
  0x15   :  { %680 = vmatmul.msk.f32.vlgmr.msra.gmra.mxu1 %vm67_vm0, %v19_v23  ;;  %753 = vmatpush.msrb.mxu3 %v64_v7  ;;  %v32_v45 = vld [vmem:[%s1320_s0 + $0x68] sm:$0xff]  ;;  %v33_v46 = vld [vmem:[%s1320_s0 + $0x70] sm:$0xff]  ;;  %v34_v47 = vld [vmem:[%s1320_s0 + $0x78] sm:$0xff] }
  0x16   :  { %v35_v48 = vld [vmem:[%s1320_s0 + $0x80] sm:$0xff]  ;;  %v36_v53 = vld [vmem:[%s1320_s0 + $0x88] sm:$0xff]  ;;  %v37_v58 = vld [vmem:[%s1320_s0 + $0x90] sm:$0xff] }
  0x17   :  { %754 = vmatpush.msrb.mxu3 %v62_v10  ;;  %v38_v63 = vld [vmem:[%s1320_s0 + $0x98] sm:$0xff]  ;;  %v39_v4 = vld [vmem:[%s1320_s0 + $0xa0] sm:$0xff]  ;;  %v41_v14 = vld [vmem:[%s1320_s0 + $0xb0] sm:$0xff] }
  0x19   :  { %673 = vmatmul.msk.f32.gmra.mxu3 %vm67_vm0, %v964_v26  ;;  %713 = vmatmul.msk.f32.gmra.mxu2 %vm67_vm0, %v20_v27 }
  0x1a   :  { %755 = vmatpush.msrb.mxu3 %v60_v13 }
  0x1c   :  { %649 = vmatmul.msk.f32.gmra.mxu0 %vm67_vm0, %v20_v27  ;;  %756 = vmatpush.msrb.mxu3 %v58_v16 }
  0x1d   :  { %681 = vmatmul.msk.f32.gmra.mxu1 %vm67_vm0, %v20_v27 }
  0x1e   :  { %757 = vmatpush.msrb.mxu3 %v56_v19  ;;  %v42_v19 = vld [vmem:[%s1320_s0 + $0xb8] sm:$0xff] }
  0x20   :  { %758 = vmatpush.msrb.mxu3 %v54_v24 }
  0x21   :  { %674 = vmatmul.msk.f32.gmra.mxu3 %vm67_vm0, %v977_v28  ;;  %714 = vmatmul.msk.f32.gmra.mxu2 %vm67_vm0, %v21_v29 }
  0x22   :  { %759 = vmatpush.msrb.mxu3 %v52_v25 }
  0x24   :  { %760 = vmatpush.msra.mxu3 %v864_v1  ;;  %650 = vmatmul.msk.f32.gmra.mxu0 %vm67_vm0, %v21_v29 }
  0x25   :  { %682 = vmatmul.msk.f32.gmra.mxu1 %vm67_vm0, %v21_v29 }
  0x26   :  { %761 = vmatpush.msra.mxu3 %v873_v3 }
  0x28   :  { %762 = vmatpush.msra.mxu3 %v881_v5 }
  0x29   :  { %675 = vmatmul.msk.f32.gmra.mxu3 %vm67_vm0, %v992_v30  ;;  %715 = vmatmul.msk.f32.gmra.mxu2 %vm67_vm0, %v22_v31 }
  0x2a   :  { %763 = vmatpush.msra.mxu3 %v896_v9  ;;  %v40_v9 = vld [vmem:[%s1320_s0 + $0xa8] sm:$0xff] }
  0x2c   :  { %651 = vmatmul.msk.f32.gmra.mxu0 %vm67_vm0, %v22_v31  ;;  %764 = vmatpush.msra.mxu3 %v908_v12 }
  0x2d   :  { %683 = vmatmul.msk.f32.gmra.mxu1 %vm67_vm0, %v22_v31 }
  0x2e   :  { %765 = vmatpush.msra.mxu3 %v920_v15 }
  0x30   :  { %766 = vmatpush.msra.mxu3 %v391_v18 }
  0x31   :  { %676 = vmatmul.msk.f32.gmra.mxu3 %vm67_vm0, %v1008_v32  ;;  %716 = vmatmul.msk.f32.gmra.mxu2 %vm67_vm0, %v23_v33 }
  0x32   :  { %767 = vmatpush.msra.mxu3 %v390_v21 }
  0x34   :  { %652 = vmatmul.msk.f32.gmra.mxu0 %vm67_vm0, %v23_v33 }
  0x35   :  { %684 = vmatmul.msk.f32.gmra.mxu1 %vm67_vm0, %v23_v33 }
  0x39   :  { %677 = vmatmul.msk.f32.gmra.mxu3 %vm67_vm0, %v1022_v34  ;;  %717 = vmatmul.msk.f32.gmra.mxu2 %vm67_vm0, %v24_v35 }
  0x3c   :  { %653 = vmatmul.msk.f32.gmra.mxu0 %vm67_vm0, %v24_v35 }
  0x3d   :  { %685 = vmatmul.msk.f32.gmra.mxu1 %vm67_vm0, %v24_v35 }
  0x41   :  { %678 = vmatmul.msk.f32.gmra.mxu3 %vm67_vm0, %v1035_v36  ;;  %718 = vmatmul.msk.f32.gmra.mxu2 %vm67_vm0, %v25_v37 }
  0x44   :  { %654 = vmatmul.msk.f32.gmra.mxu0 %vm67_vm0, %v25_v37 }
  0x45   :  { %686 = vmatmul.msk.f32.gmra.mxu1 %vm67_vm0, %v25_v37 }
  0x49   :  { %679 = vmatmul.msk.f32.gmra.mxu3 %vm67_vm0, %v1048_v38  ;;  %719 = vmatmul.msk.f32.gmra.mxu2 %vm67_vm0, %v26_v39 }
  0x4c   :  { %655 = vmatmul.msk.f32.gmra.mxu0 %vm67_vm0, %v26_v39 }
  0x4d   :  { %687 = vmatmul.msk.f32.gmra.mxu1 %vm67_vm0, %v26_v39 }
  0x51   :  { %704 = vmatmul.msk.f32.vlgmr.msrb.gmra.mxu3 %vm67_vm0, %v945_v22  ;;  %720 = vmatmul.msk.f32.gmra.mxu2 %vm67_vm0, %v27_v40 }
  0x54   :  { %656 = vmatmul.msk.f32.gmra.mxu0 %vm67_vm0, %v27_v40 }
  0x55   :  { %688 = vmatmul.msk.f32.gmra.mxu1 %vm67_vm0, %v27_v40 }
  0x59   :  { %705 = vmatmul.msk.f32.gmra.mxu3 %vm67_vm0, %v964_v26  ;;  %721 = vmatmul.msk.f32.gmra.mxu2 %vm67_vm0, %v28_v41 }
  0x5c   :  { %657 = vmatmul.msk.f32.gmra.mxu0 %vm67_vm0, %v28_v41 }
  0x5d   :  { %689 = vmatmul.msk.f32.gmra.mxu1 %vm67_vm0, %v28_v41 }
  0x61   :  { %706 = vmatmul.msk.f32.gmra.mxu3 %vm67_vm0, %v977_v28  ;;  %722 = vmatmul.msk.f32.gmra.mxu2 %vm67_vm0, %v29_v42 }
  0x64   :  { %658 = vmatmul.msk.f32.gmra.mxu0 %vm67_vm0, %v29_v42 }
  0x65   :  { %690 = vmatmul.msk.f32.gmra.mxu1 %vm67_vm0, %v29_v42 }
  0x69   :  { %707 = vmatmul.msk.f32.gmra.mxu3 %vm67_vm0, %v992_v30  ;;  %723 = vmatmul.msk.f32.gmra.mxu2 %vm67_vm0, %v30_v43 }
  0x6c   :  { %659 = vmatmul.msk.f32.gmra.mxu0 %vm67_vm0, %v30_v43 }
  0x6d   :  { %691 = vmatmul.msk.f32.gmra.mxu1 %vm67_vm0, %v30_v43 }
  0x71   :  { %708 = vmatmul.msk.f32.gmra.mxu3 %vm67_vm0, %v1008_v32  ;;  %724 = vmatmul.msk.f32.gmra.mxu2 %vm67_vm0, %v31_v44 }
  0x74   :  { %660 = vmatmul.msk.f32.gmra.mxu0 %vm67_vm0, %v31_v44 }
  0x75   :  { %692 = vmatmul.msk.f32.gmra.mxu1 %vm67_vm0, %v31_v44 }
  0x79   :  { %709 = vmatmul.msk.f32.gmra.mxu3 %vm67_vm0, %v1022_v34  ;;  %725 = vmatmul.msk.f32.gmra.mxu2 %vm67_vm0, %v32_v45 }
  0x7c   :  { %661 = vmatmul.msk.f32.gmra.mxu0 %vm67_vm0, %v32_v45 }
  0x7d   :  { %693 = vmatmul.msk.f32.gmra.mxu1 %vm67_vm0, %v32_v45 }
  0x81   :  { %710 = vmatmul.msk.f32.gmra.mxu3 %vm67_vm0, %v1035_v36  ;;  %726 = vmatmul.msk.f32.gmra.mxu2 %vm67_vm0, %v33_v46 }
  0x84   :  { %662 = vmatmul.msk.f32.gmra.mxu0 %vm67_vm0, %v33_v46 }
  0x85   :  { %694 = vmatmul.msk.f32.gmra.mxu1 %vm67_vm0, %v33_v46 }
  0x89   :  { %711 = vmatmul.msk.f32.gmra.mxu3 %vm67_vm0, %v1048_v38  ;;  %727 = vmatmul.msk.f32.gmra.mxu2 %vm67_vm0, %v34_v47 }
  0x8c   :  { %663 = vmatmul.msk.f32.gmra.mxu0 %vm67_vm0, %v34_v47 }
  0x8d   :  { %695 = vmatmul.msk.f32.gmra.mxu1 %vm67_vm0, %v34_v47 }
  0x91   :  { %728 = vmatmul.msk.f32.gmra.mxu2 %vm67_vm0, %v35_v48  ;;  %736 = vmatmul.msk.f32.vlgmr.msra.gmra.mxu3 %vm67_vm0, %v945_v22  ;;  %v181_v49 = vpop.f32.mrf.mxu0 }
  0x92   :  { %511 = vst [vmem:[#allocation2] sm:$0xff] %v181_v49  ;;  %v294_v50 = vpop.f32.mrf.mxu1 }
  0x93   :  { %543 = vst [vmem:[#allocation4] sm:$0xff] %v294_v50 }
  0x94   :  { %v253_v51 = vpop.f32.mrf.mxu3  ;;  %v415_v52 = vpop.f32.mrf.mxu2  ;;  %664 = vmatmul.msk.f32.gmra.mxu0 %vm67_vm0, %v35_v48 }
  0x95   :  { %535 = vst [vmem:[#allocation2 + $0xc0] sm:$0xff] %v253_v51  ;;  %696 = vmatmul.msk.f32.gmra.mxu1 %vm67_vm0, %v35_v48 }
  0x96   :  { %576 = vst.msk [vmem:[%s1325_s5] sm:$0xff] %vm575_vm1, %v415_v52 }
  0x99   :  { %729 = vmatmul.msk.f32.gmra.mxu2 %vm67_vm0, %v36_v53  ;;  %737 = vmatmul.msk.f32.gmra.mxu3 %vm67_vm0, %v964_v26  ;;  %v184_v54 = vpop.f32.mrf.mxu0 }
  0x9a   :  { %512 = vst [vmem:[#allocation2 + $0x8] sm:$0xff] %v184_v54  ;;  %v297_v55 = vpop.f32.mrf.mxu1 }
  0x9b   :  { %544 = vst [vmem:[#allocation4 + $0x8] sm:$0xff] %v297_v55 }
  0x9c   :  { %v256_v56 = vpop.f32.mrf.mxu3  ;;  %v418_v57 = vpop.f32.mrf.mxu2  ;;  %665 = vmatmul.msk.f32.gmra.mxu0 %vm67_vm0, %v36_v53 }
  0x9d   :  { %536 = vst [vmem:[#allocation2 + $0xc8] sm:$0xff] %v256_v56  ;;  %697 = vmatmul.msk.f32.gmra.mxu1 %vm67_vm0, %v36_v53 }
  0x9e   :  { %577 = vst.msk [vmem:[%s1325_s5 + $0x8] sm:$0xff] %vm575_vm1, %v418_v57 }
  0xa1   :  { %730 = vmatmul.msk.f32.gmra.mxu2 %vm67_vm0, %v37_v58  ;;  %738 = vmatmul.msk.f32.gmra.mxu3 %vm67_vm0, %v977_v28  ;;  %v187_v59 = vpop.f32.mrf.mxu0 }
  0xa2   :  { %513 = vst [vmem:[#allocation2 + $0x10] sm:$0xff] %v187_v59  ;;  %v300_v60 = vpop.f32.mrf.mxu1 }
  0xa3   :  { %545 = vst [vmem:[#allocation4 + $0x10] sm:$0xff] %v300_v60 }
  0xa4   :  { %v259_v61 = vpop.f32.mrf.mxu3  ;;  %v421_v62 = vpop.f32.mrf.mxu2  ;;  %666 = vmatmul.msk.f32.gmra.mxu0 %vm67_vm0, %v37_v58 }
  0xa5   :  { %537 = vst [vmem:[#allocation2 + $0xd0] sm:$0xff] %v259_v61  ;;  %698 = vmatmul.msk.f32.gmra.mxu1 %vm67_vm0, %v37_v58 }
  0xa6   :  { %578 = vst.msk [vmem:[%s1325_s5 + $0x10] sm:$0xff] %vm575_vm1, %v421_v62 }
  0xa9   :  { %731 = vmatmul.msk.f32.gmra.mxu2 %vm67_vm0, %v38_v63  ;;  %739 = vmatmul.msk.f32.gmra.mxu3 %vm67_vm0, %v992_v30  ;;  %v190_v0 = vpop.f32.mrf.mxu0 }
  0xaa   :  { %514 = vst [vmem:[#allocation2 + $0x18] sm:$0xff] %v190_v0  ;;  %v303_v1 = vpop.f32.mrf.mxu1 }
  0xab   :  { %546 = vst [vmem:[#allocation4 + $0x18] sm:$0xff] %v303_v1 }
  0xac   :  { %v262_v2 = vpop.f32.mrf.mxu3  ;;  %v424_v3 = vpop.f32.mrf.mxu2  ;;  %667 = vmatmul.msk.f32.gmra.mxu0 %vm67_vm0, %v38_v63 }
  0xad   :  { %538 = vst [vmem:[#allocation2 + $0xd8] sm:$0xff] %v262_v2  ;;  %699 = vmatmul.msk.f32.gmra.mxu1 %vm67_vm0, %v38_v63 }
  0xae   :  { %579 = vst.msk [vmem:[%s1325_s5 + $0x18] sm:$0xff] %vm575_vm1, %v424_v3 }
  0xb1   :  { %732 = vmatmul.msk.f32.gmra.mxu2 %vm67_vm0, %v39_v4  ;;  %740 = vmatmul.msk.f32.gmra.mxu3 %vm67_vm0, %v1008_v32  ;;  %v193_v5 = vpop.f32.mrf.mxu0 }
  0xb2   :  { %515 = vst [vmem:[#allocation2 + $0x20] sm:$0xff] %v193_v5  ;;  %v306_v6 = vpop.f32.mrf.mxu1 }
  0xb3   :  { %547 = vst [vmem:[#allocation4 + $0x20] sm:$0xff] %v306_v6 }
  0xb4   :  { %v265_v7 = vpop.f32.mrf.mxu3  ;;  %v427_v8 = vpop.f32.mrf.mxu2  ;;  %668 = vmatmul.msk.f32.gmra.mxu0 %vm67_vm0, %v39_v4 }
  0xb5   :  { %539 = vst [vmem:[#allocation2 + $0xe0] sm:$0xff] %v265_v7  ;;  %700 = vmatmul.msk.f32.gmra.mxu1 %vm67_vm0, %v39_v4 }
  0xb6   :  { %580 = vst.msk [vmem:[%s1325_s5 + $0x20] sm:$0xff] %vm575_vm1, %v427_v8 }
  0xb9   :  { %733 = vmatmul.msk.f32.gmra.mxu2 %vm67_vm0, %v40_v9  ;;  %741 = vmatmul.msk.f32.gmra.mxu3 %vm67_vm0, %v1022_v34  ;;  %v196_v10 = vpop.f32.mrf.mxu0 }
  0xba   :  { %516 = vst [vmem:[#allocation2 + $0x28] sm:$0xff] %v196_v10  ;;  %v309_v11 = vpop.f32.mrf.mxu1 }
  0xbb   :  { %548 = vst [vmem:[#allocation4 + $0x28] sm:$0xff] %v309_v11 }
  0xbc   :  { %v268_v12 = vpop.f32.mrf.mxu3  ;;  %v430_v13 = vpop.f32.mrf.mxu2  ;;  %669 = vmatmul.msk.f32.gmra.mxu0 %vm67_vm0, %v40_v9 }
  0xbd   :  { %540 = vst [vmem:[#allocation2 + $0xe8] sm:$0xff] %v268_v12  ;;  %701 = vmatmul.msk.f32.gmra.mxu1 %vm67_vm0, %v40_v9 }
  0xbe   :  { %581 = vst.msk [vmem:[%s1325_s5 + $0x28] sm:$0xff] %vm575_vm1, %v430_v13 }
  0xc1   :  { %734 = vmatmul.msk.f32.gmra.mxu2 %vm67_vm0, %v41_v14  ;;  %742 = vmatmul.msk.f32.gmra.mxu3 %vm67_vm0, %v1035_v36  ;;  %v199_v15 = vpop.f32.mrf.mxu0 }
  0xc2   :  { %517 = vst [vmem:[#allocation2 + $0x30] sm:$0xff] %v199_v15  ;;  %v312_v16 = vpop.f32.mrf.mxu1 }
  0xc3   :  { %549 = vst [vmem:[#allocation4 + $0x30] sm:$0xff] %v312_v16 }
  0xc4   :  { %v271_v17 = vpop.f32.mrf.mxu3  ;;  %v433_v18 = vpop.f32.mrf.mxu2  ;;  %670 = vmatmul.msk.f32.gmra.mxu0 %vm67_vm0, %v41_v14 }
  0xc5   :  { %541 = vst [vmem:[#allocation2 + $0xf0] sm:$0xff] %v271_v17  ;;  %702 = vmatmul.msk.f32.gmra.mxu1 %vm67_vm0, %v41_v14 }
  0xc6   :  { %582 = vst.msk [vmem:[%s1325_s5 + $0x30] sm:$0xff] %vm575_vm1, %v433_v18 }
  0xc9   :  { %735 = vmatmul.msk.f32.gmra.mxu2 %vm67_vm0, %v42_v19  ;;  %743 = vmatmul.msk.f32.gmra.mxu3 %vm67_vm0, %v1048_v38  ;;  %v202_v20 = vpop.f32.mrf.mxu0 }
  0xca   :  { %518 = vst [vmem:[#allocation2 + $0x38] sm:$0xff] %v202_v20  ;;  %v315_v21 = vpop.f32.mrf.mxu1 }
  0xcb   :  { %550 = vst [vmem:[#allocation4 + $0x38] sm:$0xff] %v315_v21 }
  0xcc   :  { %v274_v22 = vpop.f32.mrf.mxu3  ;;  %v436_v23 = vpop.f32.mrf.mxu2  ;;  %671 = vmatmul.msk.f32.gmra.mxu0 %vm67_vm0, %v42_v19 }
  0xcd   :  { %542 = vst [vmem:[#allocation2 + $0xf8] sm:$0xff] %v274_v22  ;;  %703 = vmatmul.msk.f32.gmra.mxu1 %vm67_vm0, %v42_v19 }
  0xce   :  { %583 = vst.msk [vmem:[%s1325_s5 + $0x38] sm:$0xff] %vm575_vm1, %v436_v23 }
  0xd1   :  { %v205_v24 = vpop.f32.mrf.mxu0 }
  0xd2   :  { %519 = vst [vmem:[#allocation2 + $0x40] sm:$0xff] %v205_v24  ;;  %v318_v25 = vpop.f32.mrf.mxu1 }
  0xd3   :  { %551 = vst [vmem:[#allocation4 + $0x40] sm:$0xff] %v318_v25 }
  0xd4   :  { %v366_v26 = vpop.f32.mrf.mxu3  ;;  %v439_v27 = vpop.f32.mrf.mxu2 }
  0xd5   :  { %567 = vst [vmem:[#allocation4 + $0xc0] sm:$0xff] %v366_v26 }
  0xd6   :  { %584 = vst.msk [vmem:[%s1325_s5 + $0x40] sm:$0xff] %vm575_vm1, %v439_v27 }
  0xd9   :  { %v208_v28 = vpop.f32.mrf.mxu0 }
  0xda   :  { %520 = vst [vmem:[#allocation2 + $0x48] sm:$0xff] %v208_v28  ;;  %v321_v29 = vpop.f32.mrf.mxu1 }
  0xdb   :  { %552 = vst [vmem:[#allocation4 + $0x48] sm:$0xff] %v321_v29 }
  0xdc   :  { %v369_v30 = vpop.f32.mrf.mxu3  ;;  %v442_v31 = vpop.f32.mrf.mxu2 }
  0xdd   :  { %568 = vst [vmem:[#allocation4 + $0xc8] sm:$0xff] %v369_v30 }
  0xde   :  { %585 = vst.msk [vmem:[%s1325_s5 + $0x48] sm:$0xff] %vm575_vm1, %v442_v31 }
  0xe1   :  { %v211_v32 = vpop.f32.mrf.mxu0 }
  0xe2   :  { %521 = vst [vmem:[#allocation2 + $0x50] sm:$0xff] %v211_v32  ;;  %v324_v33 = vpop.f32.mrf.mxu1 }
  0xe3   :  { %553 = vst [vmem:[#allocation4 + $0x50] sm:$0xff] %v324_v33 }
  0xe4   :  { %v372_v34 = vpop.f32.mrf.mxu3  ;;  %v445_v35 = vpop.f32.mrf.mxu2 }
  0xe5   :  { %569 = vst [vmem:[#allocation4 + $0xd0] sm:$0xff] %v372_v34 }
  0xe6   :  { %586 = vst.msk [vmem:[%s1325_s5 + $0x50] sm:$0xff] %vm575_vm1, %v445_v35 }
  0xe9   :  { %v214_v36 = vpop.f32.mrf.mxu0 }
  0xea   :  { %522 = vst [vmem:[#allocation2 + $0x58] sm:$0xff] %v214_v36  ;;  %v327_v37 = vpop.f32.mrf.mxu1 }
  0xeb   :  { %554 = vst [vmem:[#allocation4 + $0x58] sm:$0xff] %v327_v37 }
  0xec   :  { %v375_v38 = vpop.f32.mrf.mxu3  ;;  %v448_v39 = vpop.f32.mrf.mxu2 }
  0xed   :  { %570 = vst [vmem:[#allocation4 + $0xd8] sm:$0xff] %v375_v38 }
  0xee   :  { %587 = vst.msk [vmem:[%s1325_s5 + $0x58] sm:$0xff] %vm575_vm1, %v448_v39 }
  0xf1   :  { %v217_v40 = vpop.f32.mrf.mxu0 }
  0xf2   :  { %523 = vst [vmem:[#allocation2 + $0x60] sm:$0xff] %v217_v40  ;;  %v330_v41 = vpop.f32.mrf.mxu1 }
  0xf3   :  { %555 = vst [vmem:[#allocation4 + $0x60] sm:$0xff] %v330_v41 }
  0xf4   :  { %v378_v42 = vpop.f32.mrf.mxu3  ;;  %v451_v43 = vpop.f32.mrf.mxu2 }
  0xf5   :  { %571 = vst [vmem:[#allocation4 + $0xe0] sm:$0xff] %v378_v42 }
  0xf6   :  { %588 = vst.msk [vmem:[%s1325_s5 + $0x60] sm:$0xff] %vm575_vm1, %v451_v43 }
  0xf9   :  { %v220_v44 = vpop.f32.mrf.mxu0 }
  0xfa   :  { %524 = vst [vmem:[#allocation2 + $0x68] sm:$0xff] %v220_v44  ;;  %v333_v45 = vpop.f32.mrf.mxu1 }
  0xfb   :  { %556 = vst [vmem:[#allocation4 + $0x68] sm:$0xff] %v333_v45 }
  0xfc   :  { %v381_v46 = vpop.f32.mrf.mxu3  ;;  %v454_v47 = vpop.f32.mrf.mxu2 }
  0xfd   :  { %572 = vst [vmem:[#allocation4 + $0xe8] sm:$0xff] %v381_v46 }
  0xfe   :  { %589 = vst.msk [vmem:[%s1325_s5 + $0x68] sm:$0xff] %vm575_vm1, %v454_v47 }
 0x101   :  { %v223_v48 = vpop.f32.mrf.mxu0 }
 0x102   :  { %525 = vst [vmem:[#allocation2 + $0x70] sm:$0xff] %v223_v48  ;;  %v336_v49 = vpop.f32.mrf.mxu1 }
 0x103   :  { %557 = vst [vmem:[#allocation4 + $0x70] sm:$0xff] %v336_v49 }
 0x104   :  { %v384_v50 = vpop.f32.mrf.mxu3  ;;  %v457_v51 = vpop.f32.mrf.mxu2 }
 0x105   :  { %573 = vst [vmem:[#allocation4 + $0xf0] sm:$0xff] %v384_v50 }
 0x106   :  { %590 = vst.msk [vmem:[%s1325_s5 + $0x70] sm:$0xff] %vm575_vm1, %v457_v51 }
 0x109   :  { %v226_v52 = vpop.f32.mrf.mxu0 }
 0x10a   :  { %526 = vst [vmem:[#allocation2 + $0x78] sm:$0xff] %v226_v52  ;;  %v339_v53 = vpop.f32.mrf.mxu1 }
 0x10b   :  { %558 = vst [vmem:[#allocation4 + $0x78] sm:$0xff] %v339_v53 }
 0x10c   :  { %v387_v54 = vpop.f32.mrf.mxu3  ;;  %v460_v55 = vpop.f32.mrf.mxu2 }
 0x10d   :  { %574 = vst [vmem:[#allocation4 + $0xf8] sm:$0xff] %v387_v54 }
 0x10e   :  { %591 = vst.msk [vmem:[%s1325_s5 + $0x78] sm:$0xff] %vm575_vm1, %v460_v55 }
 0x111   :  { %v229_v56 = vpop.f32.mrf.mxu0 }
 0x112   :  { %527 = vst [vmem:[#allocation2 + $0x80] sm:$0xff] %v229_v56  ;;  %v342_v57 = vpop.f32.mrf.mxu1 }
 0x113   :  { %559 = vst [vmem:[#allocation4 + $0x80] sm:$0xff] %v342_v57 }
 0x114   :  { %v463_v58 = vpop.f32.mrf.mxu2  ;;  %v487_v59 = vpop.f32.mrf.mxu3 }
 0x115   :  { %592 = vst.msk [vmem:[%s1325_s5 + $0x80] sm:$0xff] %vm575_vm1, %v463_v58 }
 0x116   :  { %600 = vst.msk [vmem:[%s1325_s5 + $0xc0] sm:$0xff] %vm575_vm1, %v487_v59 }
 0x119   :  { %v232_v60 = vpop.f32.mrf.mxu0 }
 0x11a   :  { %528 = vst [vmem:[#allocation2 + $0x88] sm:$0xff] %v232_v60  ;;  %v345_v61 = vpop.f32.mrf.mxu1 }
 0x11b   :  { %560 = vst [vmem:[#allocation4 + $0x88] sm:$0xff] %v345_v61 }
 0x11c   :  { %v466_v62 = vpop.f32.mrf.mxu2  ;;  %v490_v63 = vpop.f32.mrf.mxu3 }
 0x11d   :  { %593 = vst.msk [vmem:[%s1325_s5 + $0x88] sm:$0xff] %vm575_vm1, %v466_v62 }
 0x11e   :  { %601 = vst.msk [vmem:[%s1325_s5 + $0xc8] sm:$0xff] %vm575_vm1, %v490_v63 }
 0x121   :  { %v235_v0 = vpop.f32.mrf.mxu0 }
 0x122   :  { %529 = vst [vmem:[#allocation2 + $0x90] sm:$0xff] %v235_v0  ;;  %v348_v1 = vpop.f32.mrf.mxu1 }
 0x123   :  { %561 = vst [vmem:[#allocation4 + $0x90] sm:$0xff] %v348_v1 }
 0x124   :  { %v469_v2 = vpop.f32.mrf.mxu2  ;;  %v493_v3 = vpop.f32.mrf.mxu3 }
 0x125   :  { %594 = vst.msk [vmem:[%s1325_s5 + $0x90] sm:$0xff] %vm575_vm1, %v469_v2 }
 0x126   :  { %602 = vst.msk [vmem:[%s1325_s5 + $0xd0] sm:$0xff] %vm575_vm1, %v493_v3 }
 0x129   :  { %v238_v4 = vpop.f32.mrf.mxu0 }
 0x12a   :  { %530 = vst [vmem:[#allocation2 + $0x98] sm:$0xff] %v238_v4  ;;  %v351_v5 = vpop.f32.mrf.mxu1 }
 0x12b   :  { %562 = vst [vmem:[#allocation4 + $0x98] sm:$0xff] %v351_v5 }
 0x12c   :  { %v472_v6 = vpop.f32.mrf.mxu2  ;;  %v496_v7 = vpop.f32.mrf.mxu3 }
 0x12d   :  { %595 = vst.msk [vmem:[%s1325_s5 + $0x98] sm:$0xff] %vm575_vm1, %v472_v6 }
 0x12e   :  { %603 = vst.msk [vmem:[%s1325_s5 + $0xd8] sm:$0xff] %vm575_vm1, %v496_v7 }
 0x131   :  { %v241_v8 = vpop.f32.mrf.mxu0 }
 0x132   :  { %531 = vst [vmem:[#allocation2 + $0xa0] sm:$0xff] %v241_v8  ;;  %v354_v9 = vpop.f32.mrf.mxu1 }
 0x133   :  { %563 = vst [vmem:[#allocation4 + $0xa0] sm:$0xff] %v354_v9 }
 0x134   :  { %v475_v10 = vpop.f32.mrf.mxu2  ;;  %v499_v11 = vpop.f32.mrf.mxu3 }
 0x135   :  { %596 = vst.msk [vmem:[%s1325_s5 + $0xa0] sm:$0xff] %vm575_vm1, %v475_v10 }
 0x136   :  { %604 = vst.msk [vmem:[%s1325_s5 + $0xe0] sm:$0xff] %vm575_vm1, %v499_v11 }
 0x139   :  { %v244_v12 = vpop.f32.mrf.mxu0 }
 0x13a   :  { %532 = vst [vmem:[#allocation2 + $0xa8] sm:$0xff] %v244_v12  ;;  %v357_v13 = vpop.f32.mrf.mxu1 }
 0x13b   :  { %564 = vst [vmem:[#allocation4 + $0xa8] sm:$0xff] %v357_v13 }
 0x13c   :  { %v478_v14 = vpop.f32.mrf.mxu2  ;;  %v502_v15 = vpop.f32.mrf.mxu3 }
 0x13d   :  { %597 = vst.msk [vmem:[%s1325_s5 + $0xa8] sm:$0xff] %vm575_vm1, %v478_v14 }
 0x13e   :  { %605 = vst.msk [vmem:[%s1325_s5 + $0xe8] sm:$0xff] %vm575_vm1, %v502_v15 }
 0x141   :  { %v247_v16 = vpop.f32.mrf.mxu0 }
 0x142   :  { %533 = vst [vmem:[#allocation2 + $0xb0] sm:$0xff] %v247_v16  ;;  %v360_v17 = vpop.f32.mrf.mxu1 }
 0x143   :  { %565 = vst [vmem:[#allocation4 + $0xb0] sm:$0xff] %v360_v17 }
 0x144   :  { %v481_v18 = vpop.f32.mrf.mxu2  ;;  %v505_v19 = vpop.f32.mrf.mxu3 }
 0x145   :  { %598 = vst.msk [vmem:[%s1325_s5 + $0xb0] sm:$0xff] %vm575_vm1, %v481_v18 }
 0x146   :  { %606 = vst.msk [vmem:[%s1325_s5 + $0xf0] sm:$0xff] %vm575_vm1, %v505_v19 }
 0x149   :  { %v250_v20 = vpop.f32.mrf.mxu0 }
 0x14a   :  { %534 = vst [vmem:[#allocation2 + $0xb8] sm:$0xff] %v250_v20  ;;  %v363_v21 = vpop.f32.mrf.mxu1 }
 0x14b   :  { %566 = vst [vmem:[#allocation4 + $0xb8] sm:$0xff] %v363_v21  ;;  %620 = dma.vmem_to_hbm [thread:$0]  %s613_s25, 4096, %s615_s28, [#allocation3], %s826_s3, %s826_s3, %s827_s13  }
 0x14c   :  { %v484_v22 = vpop.f32.mrf.mxu2  ;;  %v508_v23 = vpop.f32.mrf.mxu3  ;;  %633 = dma.vmem_to_hbm [thread:$0]  %s626_s9, 4096, %s628_s12, [#allocation5], %s826_s3, %s826_s3, %s827_s13  }
 0x14d   :  { %599 = vst.msk [vmem:[%s1325_s5 + $0xb8] sm:$0xff] %vm575_vm1, %v484_v22 }
 0x14e   :  { %607 = vst.msk [vmem:[%s1325_s5 + $0xf8] sm:$0xff] %vm575_vm1, %v508_v23 }
 0x14f   :  { %820 = dma.done.wait [#allocation3], 4096  }
 0x150   :  { %821 = vsyncadd [#allocation3], 4294963200 }
 0x151   :  { %822 = dma.done.wait [#allocation5], 4096  }
 0x152   :  { %823 = vsyncadd [#allocation5], 4294963200 }
 0x153   :  { %646 = vsyncpa [#allocation3], 1 }
 0x154   :  { %647 = vsyncpa [#allocation5], 1 }

</bundles_post_ra>
